<compile_context>
chip_gen: v7x
topology: tpu7x:2x2x1
jax: 0.10.0
libtpu: 0.0.40
codegen_flags: <defaults>
</compile_context>

<pallas_src>
import math

import jax
import jax.numpy as jnp
import numpy as np
from jax.experimental import pallas as pl
from jax.experimental.pallas import tpu as pltpu


_SQRT_2_OVER_PI = 0.7978845608028654


def _gelu_tanh(x):
    return 0.5 * x * (1.0 + jnp.tanh(_SQRT_2_OVER_PI * (x + 0.044715 * x * x * x)))


# ----------------------------------------------------------------------------
# Pallas kernel: one (row tile, hidden chunk) step of the fused FFN.
# ----------------------------------------------------------------------------
def _ffn_kernel(x_ref, w1_ref, b1_ref, w2_ref, b2_ref, o_ref, acc_ref):
    k = pl.program_id(1)

    # Initialize the (tm, D) f32 output accumulator with the second bias
    # (fused bias add: no per-k-step b2 VPU pass).
    @pl.when(k == 0)
    def _init():
        acc_ref[...] = jnp.broadcast_to(b2_ref[...], acc_ref.shape)

    # First matmul on this hidden chunk: (tm, D) @ (D, tk) -> (tm, tk).
    # bf16 MXU operands, f32 accumulation.
    x = x_ref[...].astype(jnp.bfloat16)
    h = jnp.dot(x, w1_ref[...], preferred_element_type=jnp.float32)
    h = _gelu_tanh(h + b1_ref[...])

    # Second matmul: accumulate this chunk's contribution: (tm, tk) @ (tk, D).
    acc_ref[...] += jnp.dot(h.astype(jnp.bfloat16), w2_ref[...],
                            preferred_element_type=jnp.float32)

    @pl.when(k == pl.num_programs(1) - 1)
    def _writeback():
        o_ref[...] = acc_ref[...].astype(o_ref.dtype)


def _round_up(x, m):
    return (x + m - 1) // m * m


def _pick_hidden_tile(hd, hidden_tile):
    """Largest multiple of 128 that divides hd and is <= hidden_tile (else hd)."""
    if hd <= hidden_tile:
        return hd
    best = None
    t = 128
    while t <= hidden_tile:
        if hd % t == 0:
            best = t
        t += 128
    return best if best is not None else hd


# ----------------------------------------------------------------------------
# Wrapper
# ----------------------------------------------------------------------------
def feed_forward(x, params, *, row_tile=256, hidden_tile=512):
    """x: (..., dim) float32.  params: w1 (D,Hd), b1 (Hd,), w2 (Hd,D), b2 (D,).

    row_tile / hidden_tile defaults are budgeted for v7x's 64 MiB VMEM per
    TensorCore (bf16 weight chunks + double-buffered x/out + f32 accumulator
    stay well under it even for D~4096); larger tiles are fine on v5e/v6e.
    """
    w1, b1, w2, b2 = params["w1"], params["b1"], params["w2"], params["b2"]
    D = x.shape[-1]
    Hd = w1.shape[1]
    lead = x.shape[:-1]
    R = int(np.prod(lead)) if lead else 1

    # Row tile: multiple of 8 (sublane constraint); ragged final block is
    # masked by Pallas (no wrapper-side pad/slice -> no extra HBM round trips).
    tm = min(row_tile, _round_up(R, 8))
    # Hidden chunk: must divide Hd exactly (reduction axis cannot be ragged).
    tk = _pick_hidden_tile(Hd, hidden_tile)

    x2 = x.reshape(R, D)
    # bf16 weights for the MXU (accumulation stays f32). In a real deployment
    # the weights would already be stored in bf16.
    w1_bf = w1.astype(jnp.bfloat16)
    w2_bf = w2.astype(jnp.bfloat16)
    b1_2 = b1.reshape(1, Hd).astype(jnp.float32)
    b2_2 = b2.reshape(1, D).astype(jnp.float32)

    grid = (pl.cdiv(R, tm), Hd // tk)

    out = pl.pallas_call(
        _ffn_kernel,
        out_shape=jax.ShapeDtypeStruct((R, D), x.dtype),
        grid_spec=pltpu.PrefetchScalarGridSpec(
            num_scalar_prefetch=0,
            grid=grid,
            in_specs=[
                pl.BlockSpec((tm, D), lambda i, k: (i, 0)),   # x rows: tiled
                pl.BlockSpec((D, tk), lambda i, k: (0, k)),   # W1 column chunk
                pl.BlockSpec((1, tk), lambda i, k: (0, k)),   # b1 chunk
                pl.BlockSpec((tk, D), lambda i, k: (k, 0)),   # W2 row chunk
                pl.BlockSpec((1, D), lambda i, k: (0, 0)),    # b2: resident
            ],
            out_specs=pl.BlockSpec((tm, D), lambda i, k: (i, 0)),
            scratch_shapes=[pltpu.VMEM((tm, D), jnp.float32)],
        ),
        compiler_params=pltpu.CompilerParams(
            # Row axis shards across TensorCores (v7x megacore); reduction axis
            # is last and "arbitrary" so the output block stays resident.
            dimension_semantics=("parallel", "arbitrary"),
            vmem_limit_bytes=64 * 1024 * 1024,
        ),
    )(x2, w1_bf, b1_2, w2_bf, b2_2)

    return out.reshape(*lead, D)


# ----------------------------------------------------------------------------
# Pure-JAX reference: same numerics path as the kernel (bf16 MXU operands,
# f32 accumulation, tanh GELU).  Eval-mode dropout == identity.
# ----------------------------------------------------------------------------
def reference(x, params):
    w1 = params["w1"].astype(jnp.bfloat16)
    w2 = params["w2"].astype(jnp.bfloat16)
    h = jnp.dot(x.astype(jnp.bfloat16), w1,
                preferred_element_type=jnp.float32) + params["b1"]
    h = _gelu_tanh(h)
    o = jnp.dot(h.astype(jnp.bfloat16), w2,
                preferred_element_type=jnp.float32) + params["b2"]
    return o.astype(x.dtype)


if __name__ == "__main__":
    # Small but lane-dense config: batch=2, seq=16, dim=128, hidden_dim=512.
    B, N, D, Hd = 2, 16, 128, 512

    key = jax.random.PRNGKey(0)
    kx, kw1, kb1, kw2, kb2 = jax.random.split(key, 5)

    x = jax.random.normal(kx, (B, N, D), jnp.float32)

    # PyTorch nn.Linear default init: U(-1/sqrt(fan_in), 1/sqrt(fan_in)).
    k1 = 1.0 / math.sqrt(D)
    k2 = 1.0 / math.sqrt(Hd)
    params = dict(
        w1=jax.random.uniform(kw1, (D, Hd), jnp.float32, -k1, k1),
        b1=jax.random.uniform(kb1, (Hd,), jnp.float32, -k1, k1),
        w2=jax.random.uniform(kw2, (Hd, D), jnp.float32, -k2, k2),
        b2=jax.random.uniform(kb2, (D,), jnp.float32, -k2, k2),
    )

    # Small tiles so the demo exercises both grid axes: grid = (2 row tiles,
    # 2 hidden chunks) -> accumulator init/accumulate/writeback all covered.
    out = feed_forward(x, params, row_tile=16, hidden_tile=256)
    jax.block_until_ready(out)

    ref = reference(x, params)
    # Kernel and reference use the same bf16-operand / f32-accumulate math;
    # remaining differences are chunked-accumulation ordering (~1e-6 level).
    np.testing.assert_allclose(np.asarray(out), np.asarray(ref),
                               rtol=5e-3, atol=5e-3)

    print("KERNEL_OK")
</pallas_src>

<mosaic_0001>
module attributes {stable_mosaic.version = 11 : i64} {
  func.func @_ffn_kernel(%arg0: i32, %arg1: i32, %arg2: memref<16x128xf32, #tpu.memory_space<vmem>>, %arg3: memref<128x256xbf16, #tpu.memory_space<vmem>>, %arg4: memref<1x256xf32, #tpu.memory_space<vmem>>, %arg5: memref<256x128xbf16, #tpu.memory_space<vmem>>, %arg6: memref<1x128xf32, #tpu.memory_space<vmem>>, %arg7: memref<16x128xf32, #tpu.memory_space<vmem>>, %arg8: memref<16x128xf32, #tpu.memory_space<vmem>>) attributes {dimension_semantics = [#tpu.dimension_semantics<parallel>, #tpu.dimension_semantics<arbitrary>], iteration_bounds = array<i64: 2, 2>, scalar_prefetch = 0 : i64, scratch_operands = 1 : i64, tpu.core_type = #tpu.core_type<tc>, window_params = [{transform_indices = @transform_0, window_bounds = array<i64: 16, 128>}, {transform_indices = @transform_1, window_bounds = array<i64: 128, 256>}, {transform_indices = @transform_2, window_bounds = array<i64: 1, 256>}, {transform_indices = @transform_3, window_bounds = array<i64: 256, 128>}, {pipeline_mode = #tpu.pipeline_mode<synchronous>, transform_indices = @transform_4, window_bounds = array<i64: 1, 128>}, {transform_indices = @transform_5, window_bounds = array<i64: 16, 128>}]} {
    %c0_i32 = arith.constant 0 : i32
    %0 = arith.cmpi eq, %arg1, %c0_i32 : i32
    %1 = arith.extui %0 : i1 to i32
    %c0_i32_0 = arith.constant 0 : i32
    %2 = arith.cmpi ne, %1, %c0_i32_0 : i32
    scf.if %2 {
      %c0_18 = arith.constant 0 : index
      %c0_19 = arith.constant 0 : index
      %32 = vector.load %arg6[%c0_18, %c0_19] : memref<1x128xf32, #tpu.memory_space<vmem>>, vector<1x128xf32>
      %33 = vector.shape_cast %32 : vector<1x128xf32> to vector<1x128xf32>
      %34 = vector.broadcast %33 : vector<1x128xf32> to vector<16x128xf32>
      %c0_20 = arith.constant 0 : index
      %c0_21 = arith.constant 0 : index
      %35 = vector.load %arg8[%c0_20, %c0_21] : memref<16x128xf32, #tpu.memory_space<vmem>>, vector<16x128xf32>
      tpu.vector_store %arg8[%c0_20, %c0_21], %34 {strides = array<i32>} : memref<16x128xf32, #tpu.memory_space<vmem>>, vector<16x128xf32>,
    } else {
    }
    %c0 = arith.constant 0 : index
    %c0_1 = arith.constant 0 : index
    %3 = vector.load %arg2[%c0, %c0_1] : memref<16x128xf32, #tpu.memory_space<vmem>>, vector<16x128xf32>
    %4 = arith.truncf %3 : vector<16x128xf32> to vector<16x128xbf16>
    %c0_2 = arith.constant 0 : index
    %c0_3 = arith.constant 0 : index
    %5 = vector.load %arg3[%c0_2, %c0_3] : memref<128x256xbf16, #tpu.memory_space<vmem>>, vector<128x256xbf16>
    %cst = arith.constant dense<0.000000e+00> : vector<16x256xf32>
    %6 = tpu.matmul %4, %5, %cst {dimension_numbers = #tpu.dot_dimension_numbers<[1], [0], [0], [1], [0, 0, 1, 1], [], []>} : vector<16x128xbf16>, vector<128x256xbf16>, vector<16x256xf32> -> vector<16x256xf32>
    %c0_4 = arith.constant 0 : index
    %c0_5 = arith.constant 0 : index
    %7 = vector.load %arg4[%c0_4, %c0_5] : memref<1x256xf32, #tpu.memory_space<vmem>>, vector<1x256xf32>
    %8 = vector.broadcast %7 : vector<1x256xf32> to vector<16x256xf32>
    %9 = arith.addf %6, %8 : vector<16x256xf32>
    %cst_6 = arith.constant 5.000000e-01 : f32
    %10 = vector.broadcast %cst_6 : f32 to vector<16x256xf32>
    %11 = arith.mulf %10, %9 : vector<16x256xf32>
    %cst_7 = arith.constant 4.471500e-02 : f32
    %12 = vector.broadcast %cst_7 : f32 to vector<16x256xf32>
    %13 = arith.mulf %12, %9 : vector<16x256xf32>
    %14 = arith.mulf %13, %9 : vector<16x256xf32>
    %15 = arith.mulf %14, %9 : vector<16x256xf32>
    %16 = arith.addf %9, %15 : vector<16x256xf32>
    %cst_8 = arith.constant 0.797884583 : f32
    %17 = vector.broadcast %cst_8 : f32 to vector<16x256xf32>
    %18 = arith.mulf %17, %16 : vector<16x256xf32>
    %19 = math.tanh %18 : vector<16x256xf32>
    %cst_9 = arith.constant 1.000000e+00 : f32
    %20 = vector.broadcast %cst_9 : f32 to vector<16x256xf32>
    %21 = arith.addf %20, %19 : vector<16x256xf32>
    %22 = arith.mulf %11, %21 : vector<16x256xf32>
    %c0_10 = arith.constant 0 : index
    %c0_11 = arith.constant 0 : index
    %23 = vector.load %arg8[%c0_10, %c0_11] : memref<16x128xf32, #tpu.memory_space<vmem>>, vector<16x128xf32>
    %24 = arith.truncf %22 : vector<16x256xf32> to vector<16x256xbf16>
    %c0_12 = arith.constant 0 : index
    %c0_13 = arith.constant 0 : index
    %25 = vector.load %arg5[%c0_12, %c0_13] : memref<256x128xbf16, #tpu.memory_space<vmem>>, vector<256x128xbf16>
    %cst_14 = arith.constant dense<0.000000e+00> : vector<16x128xf32>
    %26 = tpu.matmul %24, %25, %cst_14 {dimension_numbers = #tpu.dot_dimension_numbers<[1], [0], [0], [1], [0, 0, 1, 1], [], []>} : vector<16x256xbf16>, vector<256x128xbf16>, vector<16x128xf32> -> vector<16x128xf32>
    %27 = arith.addf %23, %26 : vector<16x128xf32>
    %c0_15 = arith.constant 0 : index
    %c0_16 = arith.constant 0 : index
    %28 = vector.load %arg8[%c0_15, %c0_16] : memref<16x128xf32, #tpu.memory_space<vmem>>, vector<16x128xf32>
    tpu.vector_store %arg8[%c0_15, %c0_16], %27 {strides = array<i32>} : memref<16x128xf32, #tpu.memory_space<vmem>>, vector<16x128xf32>,
    %c1_i32 = arith.constant 1 : i32
    %29 = arith.cmpi eq, %arg1, %c1_i32 : i32
    %30 = arith.extui %29 : i1 to i32
    %c0_i32_17 = arith.constant 0 : i32
    %31 = arith.cmpi ne, %30, %c0_i32_17 : i32
    scf.if %31 {
      %c0_18 = arith.constant 0 : index
      %c0_19 = arith.constant 0 : index
      %32 = vector.load %arg8[%c0_18, %c0_19] : memref<16x128xf32, #tpu.memory_space<vmem>>, vector<16x128xf32>
      %c0_20 = arith.constant 0 : index
      %c0_21 = arith.constant 0 : index
      %33 = vector.load %arg7[%c0_20, %c0_21] : memref<16x128xf32, #tpu.memory_space<vmem>>, vector<16x128xf32>
      tpu.vector_store %arg7[%c0_20, %c0_21], %32 {strides = array<i32>} : memref<16x128xf32, #tpu.memory_space<vmem>>, vector<16x128xf32>,
    } else {
    }
    return
  }
  func.func @transform_0(%arg0: i32, %arg1: i32) -> (i32, i32) {
    %c0_i32 = arith.constant 0 : i32
    %c0_i32_0 = arith.constant 0 : i32
    return %arg0, %c0_i32 : i32, i32
  }
  func.func @transform_1(%arg0: i32, %arg1: i32) -> (i32, i32) {
    %c0_i32 = arith.constant 0 : i32
    %c0_i32_0 = arith.constant 0 : i32
    return %c0_i32, %arg1 : i32, i32
  }
  func.func @transform_2(%arg0: i32, %arg1: i32) -> (i32, i32) {
    %c0_i32 = arith.constant 0 : i32
    %c0_i32_0 = arith.constant 0 : i32
    return %c0_i32, %arg1 : i32, i32
  }
  func.func @transform_3(%arg0: i32, %arg1: i32) -> (i32, i32) {
    %c0_i32 = arith.constant 0 : i32
    %c0_i32_0 = arith.constant 0 : i32
    return %arg1, %c0_i32 : i32, i32
  }
  func.func @transform_4(%arg0: i32, %arg1: i32) -> (i32, i32) {
    %c0_i32 = arith.constant 0 : i32
    %c0_i32_0 = arith.constant 0 : i32
    %c0_i32_1 = arith.constant 0 : i32
    return %c0_i32, %c0_i32_0 : i32, i32
  }
  func.func @transform_5(%arg0: i32, %arg1: i32) -> (i32, i32) {
    %c0_i32 = arith.constant 0 : i32
    %c0_i32_0 = arith.constant 0 : i32
    return %arg0, %c0_i32 : i32, i32
  }
}

</mosaic_0001>

<bundles_post_ra>
// kernel: tpu_custom_call.1
= control target key start
LH: loop header
LB: loop body
LE: loop exit
PB: predicated region body
PF: predicated region fallthrough
CT: control target
= control target key end

     0   :  { %s2025_s0 = inlined_call_operand.hbm [shape: f32[32,128], index: 0, kind: input, shape index: {}]   ;;  %s2026_s1 = inlined_call_operand.hbm [shape: bf16[128,512], index: 1, kind: input, shape index: {}]   ;;  %s2027_s2 = inlined_call_operand.hbm [shape: f32[1,512], index: 2, kind: input, shape index: {}]   ;;  %s2028_s3 = inlined_call_operand.hbm [shape: bf16[512,128], index: 3, kind: input, shape index: {}]   ;;  %s2029_s4 = inlined_call_operand.hbm [shape: f32[1,128], index: 4, kind: input, shape index: {}]   ;;  %s2030_s5 = inlined_call_operand.hbm [shape: f32[32,128], index: 5, kind: output, shape index: {}]  }
   0x1   :  { %2053 = sst [smem:[#allocation27_spill]] %s2025_s0 }
   0x2   :  { %2054 = sst [smem:[#allocation28_spill]] %s2026_s1 }
   0x3   :  { %2055 = sst [smem:[#allocation29_spill]] %s2029_s4 }
   0x4   :  { %2056 = sst [smem:[#allocation30_spill]] %s2030_s5 }
   0x5   :  { %10 = vsyncpa [#allocation4], 0 }
   0x6   :  { %12 = vsyncpa [#allocation4 + $0x1], 0 }
   0x7   :  { %13 = vsyncpa [#allocation7], 0 }
   0x8   :  { %15 = vsyncpa [#allocation7 + $0x1], 0 }
   0x9   :  { %16 = vsyncpa [#allocation10], 0 }
   0xa   :  { %18 = vsyncpa [#allocation10 + $0x1], 0 }
   0xb   :  { %19 = vsyncpa [#allocation5], 0 }
   0xc   :  { %21 = vsyncpa [#allocation5 + $0x1], 0  ;;  %s1552_s18 = smov 0   ;;  %s1554_s19 = smov 0  }
   0xd   :  { %s1556_s20 = smov 0   ;;  %s1558_s21 = smov 0  }
   0xe   :  { %s1560_s22 = smov 0   ;;  %s1562_s23 = smov 0  }
   0xf   :  { %s1564_s24 = smov 0   ;;  %s1566_s25 = smov 0  }
  0x10   :  { %s1568_s26 = smov 0   ;;  %s1570_s27 = smov 0  }
  0x11   :  { %s1572_s28 = smov 0  }
  0x12 LB: > { %2057 = sst [smem:[#allocation18_spill]] %s1478_s21  ;;  %s1606_s29 = sadd.s32 4294967295, %s1506_s28   ;;  %s1506_s28 = sphi %s1572_s28, %s27_s28   ;;  %s1502_s27 = sphi %s1570_s27, %s2107_s27   ;;  %s1498_s26 = sphi %s1568_s26, %s2115_s26   ;;  %s1494_s25 = sphi %s1566_s25, %s2105_s25   ;;  %s1490_s24 = sphi %s1564_s24, %s2114_s24   ;;  %s1486_s23 = sphi %s1562_s23, %s2113_s23   ;;  %s1482_s22 = sphi %s1560_s22, %s2112_s22   ;;  %s1478_s21 = sphi %s1558_s21, %s2111_s21   ;;  %s1474_s20 = sphi %s1556_s20, %s2110_s20   ;;  %s1470_s19 = sphi %s1554_s19, %s2109_s19   ;;  %s1466_s18 = sphi %s1552_s18, %s2108_s18  }
  0x13   : > { %2058 = sst [smem:[#allocation19_spill]] %s1490_s24  ;;  %s950_s30 = sadd.s32 4294967294, %s1506_s28  }
  0x14   : > { %2059 = sst [smem:[#allocation20_spill]] %s1494_s25  ;;  %p53_p0 = scmp.ne.s32.totalorder %s1486_s23, %s1482_s22 }
  0x15   : > { %2060 = sst [smem:[#allocation21_spill]] %s1502_s27  ;;  %p54_p1 = scmp.eq.s32.totalorder %s1506_s28, 0 }
  0x16   : > { %p59_p2 = scmp.ne.s32.totalorder %s1482_s22, %s1478_s21  ;;  %p2034_p3 = scmp.eq.s32.totalorder %s1606_s29, 0 }
  0x17   : > { %p1620_p4 = por %p54_p1, %p53_p0  ;;  %p79_p5 = scmp.ne.s32.totalorder %s1474_s20, %s1470_s19 }
  0x18   : > { %p1631_p6 = por %p2034_p3, %p59_p2  ;;  %p85_p7 = scmp.ne.s32.totalorder %s1470_s19, %s1466_s18 }
  0x19   : > { %s2061_s8 = scalar_select %p1620_p4, 1, 0 }
  0x1a   : > { %s2062_s9 = scalar_select %p1631_p6, 1, 0 }
  0x1b   : > { %p1636_p8 = por %p79_p5, %p54_p1  ;;  %p182_p9 = scmp.eq.s32.totalorder %s1606_s29, 3 }
  0x1c   : > { %p1643_p10 = por %p85_p7, %p2034_p3  ;;  %p188_p11 = scmp.eq.s32.totalorder %s950_s30, 3 }
  0x1d   : > { %p1650_p12 = por %p182_p9, %p53_p0  ;;  %p951_p13 = scmp.ge.s32.totalorder %s1506_s28, 1 }
  0x1e   : > { %s2064_s11 = scalar_select %p1643_p10, 1, 0 }
  0x1f   : > { %s2066_s12 = scalar_select %p1650_p12, 1, 0 }
  0x20   : > { %2065 = sst [smem:[#allocation22_spill]] %s2064_s11  ;;  %p1658_p6 = por %p188_p11, %p59_p2 }
  0x21   : > { %2067 = sst [smem:[#allocation23_spill]] %s2066_s12  ;;  %p195_p1 = scmp.lt.s32.totalorder %s1506_s28, 5 }
  0x22   : > { %s2068_s13 = scalar_select %p1658_p6, 1, 0 }
  0x23   : > { %p1663_p5 = pnand %p951_p13, %p195_p1  ;;  %s1508_s15 = smov [#allocation11]  }
  0x24   : > { %2069 = sst [smem:[#allocation24_spill]] %s2068_s13  ;;  %s208_s16 = sshll.u32 %s1508_s15, 4  ;;  %s209_s16 = int_to_ptr.vmem [resolvable:$true] %s208_s16 }
  0x25   : > { %s2070_s14 = scalar_select %p1663_p5, 1, 0 }
  0x26   : > { %p1054_p0 = pneg %p1663_p5  ;;  %p2036_p7 = scmp.lt.s32.totalorder %s1506_s28, 4 }
  0x27   : > { %s2073_s4 = sld [smem:[#allocation29_spill]] }
  0x28   : > { %p1672_p9 = pnand %p1054_p0, %p2034_p3  ;;  %p1680_p2 = pnand %p2036_p7, %p1636_p8 }
  0x2a   : > { %s2072_s18 = scalar_select %p1680_p2, 1, 0 }
  0x2b   : > { %p1226_p13 = pneg %p1672_p9 }
  0x2d   : > { %s1224_s15 = scalar_lea.hbm %s2073_s4, 16 }
  0x2e   : > { %p1225_p11 = scmp.ne.s32.totalorder %s2073_s4, %s1224_s15  ;;  %p1231_p3 = scmp.lt.u32.totalorder %s1224_s15, %s2073_s4 }
  0x30   : > { %p1227_p1 = pnand %p1226_p13, %p1225_p11 }
  0x32   : > { %p1228_p0 = pneg %p1227_p1 }
  0x34   : > { %p1233_p8 = pnand %p1231_p3, %p1228_p0 }
  0x36   : > { %1236 = shalt.err (!%p1233_p8)
}
  0x37   : > { %s1237_s5 = scalar_lea.vmem %s209_s16, 16  ;;  %s1244_s6 = scalar_lea.vmem %s209_s16, 32 }
  0x38   : > { %p1238_p7 = scmp.ne.s32.totalorder %s209_s16, %s1237_s5  ;;  %p1245_p10 = scmp.lt.s32.totalorder %s209_s16, %s209_s16 }
  0x39   : > { %p1246_p5 = scmp.lt.s32.totalorder %s1244_s6, %s1237_s5 }
  0x3a   : > { %p1240_p6 = pnand %p1238_p7, %p1226_p13 }
  0x3b   : > { %p1247_p4 = por %p1246_p5, %p1245_p10 }
  0x3c   : > { %p1241_p12 = pneg %p1240_p6 }
  0x3e   : > { %p1248_p2 = pnand %p1247_p4, %p1241_p12 }
  0x40   : > { %1251 = shalt.err (!%p1248_p2)
}
  0x41   : > { %1057 = dma.hbm_to_vmem [thread:$0]  (!%p1672_p9), %s2073_s4, 16, %s209_s16, [#allocation10]  }
  0x42   : > { %s2044_s21 = sand.u32 1, %s1506_s28   ;;  %s2041_s30 = sand.u32 1, %s1474_s20  }
  0x43   : > { %s1704_s15 = sshll.u32 %s2041_s30, 7  ;;  %s1014_s5 = sshll.u32 %s1498_s26, 7 }
  0x44   : > { %s2074_s1 = sld [smem:[#allocation28_spill]]  ;;  %s244_s7 = scalar_lea.vmem [#allocation6], %s1704_s15 }
  0x45   : > { %s251_s13 = sshll.u32 %s244_s7, 4  ;;  %s1717_s16 = scalar_lea.sflag [#allocation7], %s2044_s21  ;;  %s1713_s13 = int_to_ptr.vmem [resolvable:$true] %s251_s13 }
  0x46   : > { %p2075_p4 = scmp.ne.s32.totalorder %s2072_s18, 0 }
  0x48   : > { %p1723_p6 = pneg %p2075_p4 }
  0x4a   : > { %s1710_s17 = scalar_lea.hbm %s2074_s1, %s1014_s5  ;;  %s1257_s6 = scalar_lea.hbm %s2074_s1, 4096 }
  0x4b   : > { %s1252_s30 = scalar_lea.hbm %s1710_s17, 2048  ;;  %p1258_p5 = scmp.lt.u32.totalorder %s1710_s17, %s2074_s1 }
  0x4c   : > { %p1253_p3 = scmp.ne.s32.totalorder %s1710_s17, %s1252_s30  ;;  %p1259_p7 = scmp.lt.u32.totalorder %s1257_s6, %s1252_s30 }
  0x4d   : > { %p1261_p2 = scmp.lt.u32.totalorder %s1252_s30, %s1710_s17 }
  0x4e   : > { %p1255_p10 = pnand %p1723_p6, %p1253_p3  ;;  %p1260_p9 = por %p1259_p7, %p1258_p5 }
  0x50   : > { %p1256_p12 = pneg %p1255_p10  ;;  %p1262_p11 = por %p1261_p2, %p1260_p9 }
  0x52   : > { %p1263_p13 = pnand %p1262_p11, %p1256_p12 }
  0x54   : > { %1266 = shalt.err (!%p1263_p13)
}
  0x55   : > { %s1267_s21 = scalar_lea.vmem %s1713_s13, 2048  ;;  %s1509_s5 = smov [#allocation6]  }
  0x56   : > { %p1268_p1 = scmp.ne.s32.totalorder %s1713_s13, %s1267_s21  ;;  %s1272_s10 = sshll.u32 %s1509_s5, 4  ;;  %s1273_s10 = int_to_ptr.vmem [resolvable:$false] %s1272_s10 }
  0x57   : > { %s1274_s12 = scalar_lea.vmem %s1273_s10, 4096  ;;  %p1275_p3 = scmp.lt.s32.totalorder %s1713_s13, %s1273_s10 }
  0x58   : > { %p1270_p0 = pnand %p1268_p1, %p1723_p6  ;;  %p1276_p10 = scmp.lt.s32.totalorder %s1274_s12, %s1267_s21 }
  0x5a   : > { %p1271_p8 = pneg %p1270_p0  ;;  %p1277_p5 = por %p1276_p10, %p1275_p3 }
  0x5c   : > { %p1278_p7 = pnand %p1277_p5, %p1271_p8 }
  0x5e   : > { %1281 = shalt.err (!%p1278_p7)
}
  0x5f   : > { %s1510_s30 = smov 256   ;;  %s2045_s6 = smov 128  }
  0x60   : > { %s2046_s7 = smov 8   ;;  %s36_s21 = sadd.s32 1, %s1498_s26 }
  0x61   : > { %1064 = dma.hbm_to_vmem [thread:$0]  (!%p2075_p4), %s1710_s17, 2048, %s1713_s13, %s1717_s16, %s1510_s30, %s2045_s6, %s2046_s7  }
  0x62   : > { %p37_p12 = scmp.ge.s32.totalorder %s36_s21, 2  ;;  %s39_s5 = sadd.s32 1, %s1502_s27 }
  0x63   : > { %s219_s10 = sand.u32 1, %s1486_s23   ;;  %s1013_s25 = sshll.u32 %s1502_s27, 8 }
  0x64   : > { %s2117_s21 = smov (%p37_p12, %s36_s21), 0  ;;  %s2119_s5 = smov (!%p37_p12, %s39_s5), %s1502_s27 }
  0x65   : > { %2077 = sst [smem:[#allocation25_spill]] %s2117_s21  ;;  %s69_s12 = ssub.s32 %s1498_s26, %s2117_s21 }
  0x66   : > { %p41_p9 = scmp.ge.s32.totalorder %s2119_s5, 2  ;;  %p70_p2 = scmp.eq.s32.totalorder %s69_s12, 0 }
  0x67   : > { %s954_s1 = sshll.u32 %s219_s10, 4  ;;  %s2079_s17 = sadd.s32 1, %s1474_s20 }
  0x68   : > { %s2121_s5 = smov (%p41_p9, %s2119_s5), 0  ;;  %s2080_s0 = sld [smem:[#allocation27_spill]] }
  0x69   : > { %2078 = sst [smem:[#allocation26_spill]] %s2121_s5  ;;  %s43_s30 = ssub.s32 %s1502_s27, %s2121_s5 }
  0x6a   : > { %s1763_s13 = scalar_select %p70_p2, %s1474_s20, %s2079_s17  }
  0x6b   : > { %p44_p11 = scmp.eq.s32.totalorder %s43_s30, 0  ;;  %s223_s12 = scalar_lea.vmem [#allocation3], %s954_s1 }
  0x6c   : > { %s230_s21 = sshll.u32 %s223_s12, 4  ;;  %p2081_p13 = scmp.ne.s32.totalorder %s2061_s8, 0  ;;  %s1785_s21 = int_to_ptr.vmem [resolvable:$true] %s230_s21 }
  0x6d   : > { %p2082_p1 = scmp.lt.s32.totalorder %s1506_s28, 4  ;;  %s2084_s17 = sadd.s32 1, %s1486_s23 }
  0x6e   : > { %s1770_s24 = scalar_lea.hbm %s2080_s0, %s1013_s25  ;;  %s1787_s25 = scalar_lea.sflag [#allocation4], %s219_s10 }
  0x6f   : > { %p1776_p0 = pnand %p2082_p1, %p2081_p13  ;;  %s1282_s6 = scalar_lea.hbm %s1770_s24, 256 }
  0x70   : > { %s1783_s30 = scalar_select %p44_p11, %s1486_s23, %s2084_s17  }
  0x71   : > { %p1283_p8 = scmp.ne.s32.totalorder %s1770_s24, %s1282_s6  ;;  %p1284_p3 = pneg %p1776_p0 }
  0x72   : > { %s1287_s7 = scalar_lea.hbm %s2080_s0, 512  ;;  %p1288_p7 = scmp.lt.u32.totalorder %s1770_s24, %s2080_s0 }
  0x73   : > { %p1285_p10 = pnand %p1284_p3, %p1283_p8  ;;  %p1289_p12 = scmp.lt.u32.totalorder %s1287_s7, %s1282_s6 }
  0x74   : > { %p1291_p2 = scmp.lt.u32.totalorder %s1282_s6, %s1770_s24 }
  0x75   : > { %p1286_p5 = pneg %p1285_p10  ;;  %p1290_p9 = por %p1289_p12, %p1288_p7 }
  0x77   : > { %p1292_p11 = por %p1291_p2, %p1290_p9 }
  0x79   : > { %p1293_p13 = pnand %p1292_p11, %p1286_p5 }
  0x7b   : > { %1296 = shalt.err (!%p1293_p13)
}
  0x7c   : > { %s1297_s10 = scalar_lea.vmem %s1785_s21, 256  ;;  %s1513_s17 = smov [#allocation3]  }
  0x7d   : > { %p1298_p1 = scmp.ne.s32.totalorder %s1785_s21, %s1297_s10  ;;  %s1302_s1 = sshll.u32 %s1513_s17, 4  ;;  %s1303_s1 = int_to_ptr.vmem [resolvable:$false] %s1302_s1 }
  0x7e   : > { %s1304_s5 = scalar_lea.vmem %s1303_s1, 512  ;;  %p1305_p4 = scmp.lt.s32.totalorder %s1785_s21, %s1303_s1 }
  0x7f   : > { %p1300_p8 = pnand %p1298_p1, %p1284_p3  ;;  %p1306_p7 = scmp.lt.s32.totalorder %s1304_s5, %s1297_s10 }
  0x81   : > { %p1301_p10 = pneg %p1300_p8  ;;  %p1307_p12 = por %p1306_p7, %p1305_p4 }
  0x83   : > { %p1308_p9 = pnand %p1307_p12, %p1301_p10 }
  0x85   : > { %1311 = shalt.err (!%p1308_p9)
}
  0x86   : > { %s2085_s6 = smov 8   ;;  %s2086_s8 = smov 128  }
  0x87   : > { %1061 = dma.hbm_to_vmem [thread:$0]  (!%p1776_p0), %s1770_s24, 256, %s1785_s21, %s1787_s25, %s2086_s8, %s2086_s8, %s2085_s6  }
  0x88   : > { %s2087_s7 = sand.u32 1, %s1474_s20   ;;  %s1015_s17 = sshll.u32 %s1498_s26, 5 }
  0x89   : > { %s960_s12 = sshll.u32 %s2087_s7, 1  ;;  %s1824_s5 = scalar_lea.hbm %s2027_s2, %s1015_s17 }
  0x8a   : > { %s265_s11 = scalar_lea.vmem [#allocation8], %s960_s12  ;;  %s1312_s27 = scalar_lea.hbm %s1824_s5, 32 }
  0x8b   : > { %s273_s0 = sshll.u32 %s265_s11, 4  ;;  %p1313_p4 = scmp.ne.s32.totalorder %s1824_s5, %s1312_s27  ;;  %s274_s0 = int_to_ptr.vmem [resolvable:$true] %s273_s0 }
  0x8c   : > { %s1317_s25 = scalar_lea.hbm %s2027_s2, 64  ;;  %p1318_p5 = scmp.lt.u32.totalorder %s1824_s5, %s2027_s2 }
  0x8d   : > { %p1315_p3 = pnand %p1313_p4, %p1723_p6  ;;  %p1319_p2 = scmp.lt.u32.totalorder %s1317_s25, %s1312_s27 }
  0x8e   : > { %p1321_p13 = scmp.lt.u32.totalorder %s1312_s27, %s1824_s5 }
  0x8f   : > { %p1316_p0 = pneg %p1315_p3  ;;  %p1320_p11 = por %p1319_p2, %p1318_p5 }
  0x91   : > { %p1322_p1 = por %p1321_p13, %p1320_p11 }
  0x93   : > { %p1323_p8 = pnand %p1322_p1, %p1316_p0 }
  0x95   : > { %1326 = shalt.err (!%p1323_p8)
}
  0x96   : > { %s1327_s7 = scalar_lea.vmem %s274_s0, 32  ;;  %s1514_s12 = smov [#allocation8]  }
  0x97   : > { %p1328_p10 = scmp.ne.s32.totalorder %s274_s0, %s1327_s7  ;;  %s1332_s17 = sshll.u32 %s1514_s12, 4  ;;  %s1333_s17 = int_to_ptr.vmem [resolvable:$false] %s1332_s17 }
  0x98   : > { %s1334_s1 = scalar_lea.vmem %s1333_s17, 64  ;;  %p1335_p9 = scmp.lt.s32.totalorder %s274_s0, %s1333_s17 }
  0x99   : > { %p1330_p7 = pnand %p1328_p10, %p1723_p6  ;;  %p1336_p4 = scmp.lt.s32.totalorder %s1334_s1, %s1327_s7 }
  0x9b   : > { %p1331_p12 = pneg %p1330_p7  ;;  %p1337_p3 = por %p1336_p4, %p1335_p9 }
  0x9d   : > { %p1338_p2 = pnand %p1337_p3, %p1331_p12 }
  0x9f   : > { %1341 = shalt.err (!%p1338_p2)
}
  0xa0   : > { %p2088_p5 = scmp.ne.s32.totalorder %s2072_s18, 0  ;;  %s1016_s27 = sshll.u32 %s1498_s26, 11 }
  0xa1   : > { %s284_s10 = scalar_lea.vmem [#allocation9], %s1704_s15  ;;  %s1849_s25 = scalar_lea.hbm %s2028_s3, %s1016_s27 }
  0xa2   : > { %1067 = dma.hbm_to_vmem [thread:$0]  (!%p2088_p5), %s1824_s5, 32, %s274_s0, %s1717_s16  }
  0xa3   : > { %s291_s11 = sshll.u32 %s284_s10, 4  ;;  %s2089_s6 = sand.u32 1, %s1506_s28   ;;  %s1851_s11 = int_to_ptr.vmem [resolvable:$true] %s291_s11 }
  0xa4   : > { %s1855_s8 = scalar_lea.sflag [#allocation10], %s2089_s6  ;;  %s1342_s7 = scalar_lea.hbm %s1849_s25, 2048 }
  0xa5   : > { %p1343_p0 = scmp.ne.s32.totalorder %s1849_s25, %s1342_s7  ;;  %s1347_s16 = scalar_lea.hbm %s2028_s3, 4096 }
  0xa6   : > { %p1348_p1 = scmp.lt.u32.totalorder %s1849_s25, %s2028_s3  ;;  %p1349_p8 = scmp.lt.u32.totalorder %s1347_s16, %s1342_s7 }
  0xa7   : > { %p1345_p11 = pnand %p1343_p0, %p1723_p6  ;;  %p1351_p7 = scmp.lt.u32.totalorder %s1342_s7, %s1849_s25 }
  0xa8   : > { %p1350_p10 = por %p1349_p8, %p1348_p1 }
  0xa9   : > { %p1346_p13 = pneg %p1345_p11 }
  0xaa   : > { %p1352_p12 = por %p1351_p7, %p1350_p10 }
  0xac   : > { %p1353_p9 = pnand %p1352_p12, %p1346_p13 }
  0xae   : > { %1356 = shalt.err (!%p1353_p9)
}
  0xaf   : > { %s1357_s17 = scalar_lea.vmem %s1851_s11, 2048  ;;  %s1515_s1 = smov [#allocation9]  }
  0xb0   : > { %p1358_p4 = scmp.ne.s32.totalorder %s1851_s11, %s1357_s17  ;;  %s1362_s27 = sshll.u32 %s1515_s1, 4  ;;  %s1363_s27 = int_to_ptr.vmem [resolvable:$false] %s1362_s27 }
  0xb1   : > { %s1364_s10 = scalar_lea.vmem %s1363_s27, 4096  ;;  %p1365_p0 = scmp.lt.s32.totalorder %s1851_s11, %s1363_s27 }
  0xb2   : > { %p1360_p3 = pnand %p1358_p4, %p1723_p6  ;;  %p1366_p11 = scmp.lt.s32.totalorder %s1364_s10, %s1357_s17 }
  0xb4   : > { %p1361_p2 = pneg %p1360_p3  ;;  %p1367_p1 = por %p1366_p11, %p1365_p0 }
  0xb6   : > { %p1368_p8 = pnand %p1367_p1, %p1361_p2 }
  0xb8   : > { %1371 = shalt.err (!%p1368_p8)
}
  0xb9   : > { %s1516_s24 = smov 64   ;;  %s1517_s21 = smov 4  }
  0xba   : > { %1070 = dma.hbm_to_vmem [thread:$0]  (!%p2088_p5), %s1849_s25, 2048, %s1851_s11, %s1855_s8, %s1516_s24, %s1516_s24, %s1517_s21  }
  0xbb   : > { %p2090_p6 = scmp.ne.s32.totalorder %s2070_s14, 0 }
  0xbc   : > { %s1882_s4 = sand.u32 (!%p2090_p6), 1, %s1482_s22   ;;  %p2091_p13 = scmp.ne.s32.totalorder (!%p2090_p6), %s2062_s9, 0 }
  0xbd   : > { %303 = sbr.rel (%p2090_p6) target bundleno = 761 (0x2f9), region = 40  ;;  %s967_s6 = sshll.u32 (!%p2090_p6), %s1882_s4, 4 }
  0xbe   : > { %s306_s7 = scalar_lea.sflag (!%p2090_p6), [#allocation4], %s1882_s4  ;;  %s1886_s0 = scalar_lea.vmem (!%p2090_p6), [#allocation3], %s967_s6 }
  0xc4   : > { %1445 = dma.done.wait (%p2091_p13), %s306_s7, 256  }
  0xc5   : > { %1447 = vsyncadd (%p2091_p13), %s306_s7, 4294967040  ;;  %s2092_s18 = sld [smem:[#allocation22_spill]]  ;;  %s314_s14 = sand.u32 1, %s1606_s29  }
  0xc6   : > { %s316_s11 = sand.u32 1, %s1470_s19   ;;  %s315_s8 = scalar_lea.sflag [#allocation7], %s314_s14 }
  0xc7   : > { %s968_s25 = sshll.u32 %s316_s11, 7 }
  0xc8   : > { %s1894_s15 = scalar_lea.vmem [#allocation6], %s968_s25 }
  0xcb   : > { %p2093_p5 = scmp.ne.s32.totalorder %s2092_s18, 0 }
  0xcd   : > { %1449 = dma.done.wait (%p2093_p5), %s315_s8, 2080  }
  0xce   : > { %1451 = vsyncadd (%p2093_p5), %s315_s8, 4294965216  ;;  %s1900_s16 = sshll.u32 %s316_s11, 1  ;;  %s333_s5 = scalar_lea.sflag [#allocation10], %s314_s14 }
  0xcf   : > { %s327_s9 = scalar_lea.vmem [#allocation8], %s1900_s16  ;;  %s1903_s12 = scalar_lea.vmem [#allocation9], %s968_s25 }
  0xd0   : > { %1453 = dma.done.wait (%p2093_p5), %s333_s5, 2048  }
  0xd1   : > { %1455 = vsyncadd (%p2093_p5), %s333_s5, 4294965248  ;;  %p2094_p10 = scmp.eq.s32.totalorder %s1606_s29, 0 }
  0xd3   : > { %1457 = dma.done.wait (%p2094_p10), [#allocation10], 16   ;;  %p2095_p7 = pmov %p2094_p10 }
  0xd4   : > { %s1913_s17 = scalar_lea.vmem [#allocation12], %s967_s6  ;;  %s2096_s1 = sld [smem:[#allocation19_spill]] }
  0xd5   : > { %1459 = vsyncadd (%p2095_p7), [#allocation10], 4294967280 }
  0xda   : > { %p973_p12 = scmp.ne.s32.totalorder %s2096_s1, 0 }
  0xdb   : > { %v974_v0 = vld [vmem:[#allocation11] ss:$0 sm:$0xff] (!%p973_p12) }
  0xdc   : > { %391 = sbr.rel (%p973_p12) target bundleno = 227 (0xe3), region = 64  ;;  %399 = vst [vmem:[#allocation2] sm:$0xff] (!%p973_p12), %v974_v0  ;;  %400 = vst [vmem:[#allocation2 + $0x8] sm:$0xff] (!%p973_p12), %v974_v0 }
  0xe3 PF: > { %v1176_v1 = vld [vmem:[%s1894_s15 + $0x4] ss:$8 sps:$4 sm:$0xff]   ;;  %v1178_v2 = vld [vmem:[%s1894_s15] ss:$8 sps:$4 sm:$0xff]   ;;  %v1518_v3 = vmov 0   ;;  %v1204_v25 = vld [vmem:[%s1903_s12 + $0x50] sm:$0xff]   ;;  %v422_v37 = vlaneseq }
  0xe4   : > { %544 = vmatprep.mubr.bf16.mxu0 %v1518_v3  ;;  %512 = vmatprep.subr.bf16.mxu0 %v1176_v1  ;;  %v1179_v4 = vld [vmem:[%s1894_s15 + $0x14] ss:$8 sps:$4 sm:$0xff]   ;;  %v1181_v5 = vld [vmem:[%s1894_s15 + $0x10] ss:$8 sps:$4 sm:$0xff]   ;;  %v1182_v6 = vld [vmem:[%s1894_s15 + $0x24] ss:$8 sps:$4 sm:$0xff]  }
  0xe5   : > { %513 = vmatpush1.bf16.msra.mxu0 %v1178_v2  ;;  %v1184_v7 = vld [vmem:[%s1894_s15 + $0x20] ss:$8 sps:$4 sm:$0xff]   ;;  %v1185_v8 = vld [vmem:[%s1894_s15 + $0x34] ss:$8 sps:$4 sm:$0xff]   ;;  %v1187_v9 = vld [vmem:[%s1894_s15 + $0x30] ss:$8 sps:$4 sm:$0xff]  }
  0xe6   : > { %514 = vmatprep.subr.bf16.mxu0 %v1179_v4  ;;  %v1188_v10 = vld [vmem:[%s1894_s15 + $0x44] ss:$8 sps:$4 sm:$0xff]   ;;  %v1190_v11 = vld [vmem:[%s1894_s15 + $0x40] ss:$8 sps:$4 sm:$0xff]   ;;  %v1191_v12 = vld [vmem:[%s1894_s15 + $0x54] ss:$8 sps:$4 sm:$0xff]  }
  0xe7   : > { %v1193_v13 = vld [vmem:[%s1894_s15 + $0x50] ss:$8 sps:$4 sm:$0xff]   ;;  %v1194_v14 = vld [vmem:[%s1894_s15 + $0x64] ss:$8 sps:$4 sm:$0xff]   ;;  %v1196_v15 = vld [vmem:[%s1894_s15 + $0x60] ss:$8 sps:$4 sm:$0xff]  }
  0xe8   : > { %v1197_v16 = vld [vmem:[%s1894_s15 + $0x74] ss:$8 sps:$4 sm:$0xff]   ;;  %v1199_v17 = vld [vmem:[%s1894_s15 + $0x70] ss:$8 sps:$4 sm:$0xff]   ;;  %v1200_v21 = vld [vmem:[%s1903_s12 + $0x40] sm:$0xff]   ;;  %v423_v38 = vshrl.u32 %v422_v37, 7 }
  0xe9   : > { %515 = vmatpush1.bf16.msra.mxu0 %v1181_v5  ;;  %v401_v18 = vld [vmem:[%s1886_s0] sm:$0xff]  ;;  %v402_v19 = vld [vmem:[%s1886_s0 + $0x8] sm:$0xff]  ;;  %1018 = vmatprep.subr.bf16.mxu1 %v1200_v21  ;;  %s2097_s29 = sld [smem:[#allocation19_spill]] }
  0xea   : > { %516 = vmatprep.subr.bf16.mxu0 %v1182_v6  ;;  %v403_v20 = vpack.c.bf16 %v402_v19, %v401_v18  ;;  %v1201_v22 = vld [vmem:[%s1903_s12] sm:$0xff]   ;;  %v1202_v23 = vld [vmem:[%s1903_s12 + $0x48] sm:$0xff]   ;;  %v1205_v26 = vld [vmem:[%s1903_s12 + $0x10] sm:$0xff]   ;;  %v424_v39 = vsub.s32 0, %v423_v38  ;;  %v428_v41 = vsub.s32 1, %v423_v38 }
  0xeb   : > { %1019 = vmatpush3.bf16.msra.mxu1 %v1201_v22  ;;  %v1203_v24 = vld [vmem:[%s1903_s12 + $0x8] sm:$0xff]   ;;  %v1206_v27 = vld [vmem:[%s1903_s12 + $0x58] sm:$0xff]   ;;  %v1208_v29 = vld [vmem:[%s1903_s12 + $0x60] sm:$0xff]  }
  0xec   : > { %1020 = vmatprep.subr.bf16.mxu1 %v1202_v23  ;;  %v1207_v28 = vld [vmem:[%s1903_s12 + $0x18] sm:$0xff]   ;;  %v1209_v30 = vld [vmem:[%s1903_s12 + $0x20] sm:$0xff]   ;;  %v1210_v31 = vld [vmem:[%s1903_s12 + $0x68] sm:$0xff]  }
  0xed   : > { %517 = vmatpush1.bf16.msra.mxu0 %v1184_v7  ;;  %v1211_v32 = vld [vmem:[%s1903_s12 + $0x28] sm:$0xff]   ;;  %v1212_v33 = vld [vmem:[%s1903_s12 + $0x70] sm:$0xff]   ;;  %v1214_v35 = vld [vmem:[%s1903_s12 + $0x78] sm:$0xff]  }
  0xee   : > { %518 = vmatprep.subr.bf16.mxu0 %v1185_v8  ;;  %v1213_v34 = vld [vmem:[%s1903_s12 + $0x30] sm:$0xff]   ;;  %v1215_v36 = vld [vmem:[%s1903_s12 + $0x38] sm:$0xff]  }
  0xef   : > { %1021 = vmatpush3.bf16.msra.mxu1 %v1203_v24  ;;  %v420_v40 = vld [vmem:[%s327_s9] sm:$0x3]  ;;  %p1007_p9 = scmp.ne.s32.totalorder %s2097_s29, 1 }
  0xf0   : > { %1022 = vmatprep.subr.bf16.mxu1 %v1204_v25  ;;  %v425_v42 = vrot.slane %v420_v40, %v424_v39  ;;  %v429_v43 = vrot.slane %v420_v40, %v428_v41 }
  0xf1   : > { %519 = vmatpush1.bf16.msra.mxu0 %v1187_v9 }
  0xf2   : > { %520 = vmatprep.subr.bf16.mxu0 %v1188_v10 }
  0xf3   : > { %1023 = vmatpush3.bf16.msra.mxu1 %v1205_v26 }
  0xf4   : > { %1024 = vmatprep.subr.bf16.mxu1 %v1206_v27  ;;  %v591_v27 = vld [vmem:[#allocation2] sm:$0xff] }
  0xf5   : > { %521 = vmatpush1.bf16.msra.mxu0 %v1190_v11 }
  0xf6   : > { %522 = vmatprep.subr.bf16.mxu0 %v1191_v12 }
  0xf7   : > { %1025 = vmatpush3.bf16.msra.mxu1 %v1207_v28 }
  0xf8   : > { %1026 = vmatprep.subr.bf16.mxu1 %v1208_v29 }
  0xf9   : > { %523 = vmatpush1.bf16.msra.mxu0 %v1193_v13 }
  0xfa   : > { %524 = vmatprep.subr.bf16.mxu0 %v1194_v14 }
  0xfb   : > { %1027 = vmatpush3.bf16.msra.mxu1 %v1209_v30 }
  0xfc   : > { %1028 = vmatprep.subr.bf16.mxu1 %v1210_v31  ;;  %v592_v31 = vld [vmem:[#allocation2 + $0x8] sm:$0xff] }
  0xfd   : > { %525 = vmatpush1.bf16.msra.mxu0 %v1196_v15 }
  0xfe   : > { %526 = vmatprep.subr.bf16.mxu0 %v1197_v16 }
  0xff   : > { %1029 = vmatpush3.bf16.msra.mxu1 %v1211_v32 }
 0x100   : > { %1030 = vmatprep.subr.bf16.mxu1 %v1212_v33 }
 0x101   : > { %527 = vmatpush1.bf16.msra.mxu0 %v1199_v17 }
 0x103   : > { %1031 = vmatpush3.bf16.msra.mxu1 %v1213_v34 }
 0x104   : > { %545 = vmatmul.mubr.bf16.vlgmr.msra.gmra.mrb[0].mxu0 %v403_v20  ;;  %1032 = vmatprep.subr.bf16.mxu1 %v1214_v35 }
 0x107   : > { %1033 = vmatpush3.bf16.msra.mxu1 %v1215_v36 }
 0x1d7   : > { %v546_v44 = vpop.f32.mrb[0].mxu0 }
 0x1d8   : > { %v547_v45 = vadd.f32 %v546_v44, %v425_v42  ;;  %v548_v46 = vpop.f32.mrb[1].mxu0 }
 0x1d9   : > { %v549_v47 = vadd.f32 %v548_v46, %v429_v43  ;;  %v550_v48 = vpop.f32.mrb[2].mxu0 }
 0x1da   : > { %v559_v49 = vmul.f32 0.044715, %v547_v45  ;;  %v551_v50 = vadd.f32 %v550_v48, %v425_v42  ;;  %v552_v51 = vpop.f32.mrb[3].mxu0  ;;  %v555_v14 = vmul.f32 0.5, %v547_v45 }
 0x1db   : > { %v560_v52 = vmul.f32 0.044715, %v549_v47  ;;  %v553_v53 = vadd.f32 %v552_v51, %v429_v43  ;;  %v556_v17 = vmul.f32 0.5, %v549_v47 }
 0x1dc   : > { %v563_v54 = vmul.f32 %v559_v49, %v547_v45  ;;  %v561_v55 = vmul.f32 0.044715, %v551_v50  ;;  %v557_v15 = vmul.f32 0.5, %v551_v50 }
 0x1dd   : > { %v562_v56 = vmul.f32 0.044715, %v553_v53  ;;  %v564_v57 = vmul.f32 %v560_v52, %v549_v47  ;;  %v558_v18 = vmul.f32 0.5, %v553_v53 }
 0x1de   : > { %v567_v58 = vmul.f32 %v563_v54, %v547_v45  ;;  %v565_v59 = vmul.f32 %v561_v55, %v551_v50 }
 0x1df   : > { %v566_v60 = vmul.f32 %v562_v56, %v553_v53  ;;  %v568_v61 = vmul.f32 %v564_v57, %v549_v47 }
 0x1e0   : > { %v569_v62 = vmul.f32 %v565_v59, %v551_v50  ;;  %v571_v63 = vadd.f32 %v567_v58, %v547_v45 }
 0x1e1   : > { %v570_v0 = vmul.f32 %v566_v60, %v553_v53  ;;  %v572_v1 = vadd.f32 %v568_v61, %v549_v47 }
 0x1e2   : > { %v573_v2 = vadd.f32 %v569_v62, %v551_v50  ;;  %v575_v3 = vmul.f32 0.7978846, %v571_v63 }
 0x1e3   : > { %v574_v4 = vadd.f32 %v570_v0, %v553_v53  ;;  %v576_v5 = vmul.f32 0.7978846, %v572_v1 }
 0x1e4   : > { %v577_v6 = vmul.f32 0.7978846, %v573_v2  ;;  %1216 = vtanh.f32 %v575_v3 }
 0x1e5   : > { %v578_v7 = vmul.f32 0.7978846, %v574_v4  ;;  %1218 = vtanh.f32 %v576_v5 }
 0x1e6   : > { %1220 = vtanh.f32 %v577_v6 }
 0x1e7   : > { %1222 = vtanh.f32 %v578_v7 }
 0x1ee   : > { %v1217_v8 = vpop.eup %1216 }
 0x1ef   : > { %v1219_v9 = vpop.eup %1218  ;;  %v583_v10 = vadd.f32 1.0, %v1217_v8 }
 0x1f0   : > { %v1221_v11 = vpop.eup %1220  ;;  %v584_v12 = vadd.f32 1.0, %v1219_v9 }
 0x1f1   : > { %v1223_v13 = vpop.eup %1222  ;;  %v585_v16 = vadd.f32 1.0, %v1221_v11  ;;  %v587_v20 = vmul.f32 %v583_v10, %v555_v14 }
 0x1f2   : > { %v586_v19 = vadd.f32 1.0, %v1223_v13  ;;  %v588_v22 = vmul.f32 %v584_v12, %v556_v17 }
 0x1f3   : > { %v589_v21 = vmul.f32 %v585_v16, %v557_v15 }
 0x1f4   : > { %v590_v23 = vmul.f32 %v586_v19, %v558_v18 }
 0x1f5   : > { %v593_v24 = vpack.c.bf16 %v589_v21, %v587_v20 }
 0x1f6   : > { %v594_v25 = vpack.c.bf16 %v590_v23, %v588_v22 }
 0x1f8   : > { %755 = vmatprep.mubr.bf16.mxu1 %v594_v25 }
 0x1f9   : > { %756 = vmatmul.mubr.bf16.vlgmr.msra.gmra.mrb[0].mxu1 %v593_v24 }
 0x2cc   : > { %v1034_v26 = vpop.f32.mrb[0].mxu1 }
 0x2cd   : > { %v1035_v28 = vpop.f32.mrb[1].mxu1 }
 0x2ce   : > { %v1036_v29 = vadd.f32 %v1035_v28, %v1034_v26  ;;  %v1037_v30 = vpop.f32.mrb[2].mxu1  ;;  %771 = sbr.rel (%p1007_p9) target bundleno = 733 (0x2dd), region = 68 }
 0x2cf   : > { %v1038_v32 = vpop.f32.mrb[3].mxu1 }
 0x2d0   : > { %v764_v33 = vadd.f32 %v1036_v29, %v591_v27  ;;  %v1039_v34 = vadd.f32 %v1038_v32, %v1037_v30 }
 0x2d2   : > { %766 = vst [vmem:[#allocation2] sm:$0xff] %v764_v33  ;;  %v765_v35 = vadd.f32 %v1039_v34, %v592_v31 }
 0x2d4   : > { %767 = vst [vmem:[#allocation2 + $0x8] sm:$0xff] %v765_v35 }
 0x2d9   : > { %v772_v36 = vld [vmem:[#allocation2] sm:$0xff] }
 0x2da   : > { %774 = vst [vmem:[%s1913_s17] sm:$0xff] %v772_v36 }
 0x2db   : > { %v773_v37 = vld [vmem:[#allocation2 + $0x8] sm:$0xff] }
 0x2dc   : > { %775 = vst [vmem:[%s1913_s17 + $0x8] sm:$0xff] %v773_v37 }
 0x2dd PF: > { %s2098_s27 = sld [smem:[#allocation20_spill]]  ;;  %s2099_s10 = sld [smem:[#allocation23_spill]] }
 0x2de   : > { %s2100_s7 = sld [smem:[#allocation30_spill]]  ;;  %s790_s18 = sshll.u32 %s1913_s17, 4  ;;  %s1962_s18 = int_to_ptr.vmem [resolvable:$true] %s790_s18 }
 0x2df   : > { %s777_s14 = scalar_lea.sflag [#allocation5], %s1882_s4  ;;  %s1372_s11 = scalar_lea.vmem %s1962_s18, 256 }
 0x2e0   : > { %p1373_p4 = scmp.ne.s32.totalorder %s1962_s18, %s1372_s11  ;;  %s1519_s25 = smov [#allocation12]  }
 0x2e1   : > { %s1376_s8 = sshll.u32 %s1519_s25, 4  ;;  %s1377_s8 = int_to_ptr.vmem [resolvable:$false] %s1376_s8 }
 0x2e2   : > { %s1378_s15 = scalar_lea.vmem %s1377_s8, 512  ;;  %p1379_p11 = scmp.lt.s32.totalorder %s1962_s18, %s1377_s8 }
 0x2e3   : > { %s1017_s24 = sshll.u32 %s2098_s27, 8  ;;  %p2101_p3 = scmp.ne.s32.totalorder %s2099_s10, 0 }
 0x2e4   : > { %s1959_s0 = scalar_lea.hbm %s2100_s7, %s1017_s24  ;;  %p1380_p1 = scmp.lt.s32.totalorder %s1378_s15, %s1372_s11 }
 0x2e5   : > { %p1374_p2 = pnand %p1373_p4, %p2101_p3 }
 0x2e6   : > { %p1381_p8 = por %p1380_p1, %p1379_p11 }
 0x2e7   : > { %p1375_p0 = pneg %p1374_p2 }
 0x2e9   : > { %p1382_p6 = pnand %p1381_p8, %p1375_p0 }
 0x2eb   : > { %1385 = shalt.err (!%p1382_p6)
}
 0x2ec   : > { %s1386_s16 = scalar_lea.hbm %s1959_s0, 256  ;;  %s1390_s12 = scalar_lea.hbm %s2100_s7, 512 }
 0x2ed   : > { %p1387_p13 = scmp.ne.s32.totalorder %s1959_s0, %s1386_s16  ;;  %p1391_p7 = scmp.lt.u32.totalorder %s1959_s0, %s2100_s7 }
 0x2ee   : > { %p1392_p12 = scmp.lt.u32.totalorder %s1390_s12, %s1386_s16  ;;  %p1394_p4 = scmp.lt.u32.totalorder %s1386_s16, %s1959_s0 }
 0x2ef   : > { %p1388_p5 = pnand %p1387_p13, %p2101_p3 }
 0x2f0   : > { %p1393_p9 = por %p1392_p12, %p1391_p7 }
 0x2f1   : > { %p1389_p10 = pneg %p1388_p5 }
 0x2f2   : > { %p1395_p2 = por %p1394_p4, %p1393_p9 }
 0x2f4   : > { %p1396_p0 = pnand %p1395_p2, %p1389_p10 }
 0x2f6   : > { %1399 = shalt.err (!%p1396_p0)
}
 0x2f7   : > { %s1520_s29 = smov 128   ;;  %s1521_s27 = smov 8  }
 0x2f8   : > { %1052 = dma.vmem_to_hbm [thread:$0]  (%p2101_p3), %s1962_s18, 256, %s1959_s0, %s777_s14, %s1520_s29, %s1520_s29, %s1521_s27  }
 0x2f9 PF: > { %s2102_s24 = sld [smem:[#allocation18_spill]]  ;;  %s2103_s21 = sld [smem:[#allocation24_spill]] }
 0x2fa   : > { %p1078_p11 = scmp.ge.s32.totalorder %s1506_s28, 2 }
 0x2ff   : > { %s805_s6 = sand.u32 1, %s2102_s24   ;;  %p2104_p1 = scmp.ne.s32.totalorder %s2103_s21, 0 }
 0x300   : > { %s806_s11 = scalar_lea.sflag [#allocation5], %s805_s6 }
 0x301   : > { %p1072_p8 = pnand %p1078_p11, %p2104_p1 }
 0x303   : > { %1461 = dma.done.wait (!%p1072_p8), %s806_s11, 256  }
 0x304   : > { %1463 = vsyncadd (!%p1072_p8), %s806_s11, 4294967040  ;;  %s27_s28 = sadd.s32 1, %s1506_s28   ;;  %s2105_s25 = sld [smem:[#allocation21_spill]] }
 0x305   : > { %p24_p6 = scmp.ge.s32.totalorder %s27_s28, 6   ;;  %s2106_s4 = sld [smem:[#allocation25_spill]] }
 0x306   : > { %s2107_s27 = sld [smem:[#allocation26_spill]]  ;;  %s2108_s18 = smov %s1470_s19 }
 0x307   : > { %s2109_s19 = smov %s1474_s20  ;;  %s2110_s20 = smov %s1763_s13 }
 0x308   : > { %s2111_s21 = smov %s1482_s22  ;;  %s2112_s22 = smov %s1486_s23 }
 0x309   : > { %s2113_s23 = smov %s1783_s30  ;;  %s2114_s24 = smov %s1498_s26 }
 0x30a   :  { %26 = sbr.rel (!%p24_p6) target bundleno = 18 (0x12), region = 134 }
 0x30b   : > { %s2115_s26 = smov %s2106_s4 }
 0x311   :  { %811 = vsyncpa [#allocation4], 1 }
 0x312   :  { %813 = vsyncpa [#allocation4 + $0x1], 1 }
 0x313   :  { %814 = vsyncpa [#allocation7], 1 }
 0x314   :  { %816 = vsyncpa [#allocation7 + $0x1], 1 }
 0x315   :  { %817 = vsyncpa [#allocation10], 1 }
 0x316   :  { %819 = vsyncpa [#allocation10 + $0x1], 1 }
 0x317   :  { %820 = vsyncpa [#allocation5], 1 }
 0x318   :  { %822 = vsyncpa [#allocation5 + $0x1], 1 }

</bundles_post_ra>
